<compile_context>
chip_gen: v6e
topology: v6e:2x2x1
jax: 0.10.0
libtpu: 0.0.40
codegen_flags: <defaults>
</compile_context>

<pallas_src>
import functools

import jax
import jax.numpy as jnp
from jax.experimental import pallas as pl
from jax.experimental.pallas import tpu as pltpu


def _highdiv_kernel(x_ref, w1_ref, w2_ref, o_ref, *, order, c_inter,
                    inv_order, compute_dtype):
    # x_ref : (C_in, TM)                one batch element, one spatial tile
    # w1_ref: (num1*C_inter, C_in)      all stage-1 1x1 conv weights, stacked
    # w2_ref: (order, C_in, C_inter)    stage-2 1x1 conv weights
    # o_ref : (C_in, TM)
    x_in = x_ref[...]                                    # io dtype, lane-dense
    x_c = x_in.astype(compute_dtype)                     # matmul/product operand

    # One fused MXU pass for every stage-1 1x1 conv.
    y_all = jnp.dot(w1_ref[...], x_c,
                    preferred_element_type=jnp.float32)  # (num1*C_inter, TM)
    y_all = y_all.astype(compute_dtype)

    acc = None                                           # f32 accumulator
    cnt = 0
    for j in range(order):
        y_temp = None
        for _ in range(j + 1):
            yi = y_all[cnt * c_inter:(cnt + 1) * c_inter, :]   # (C_inter, TM)
            y_temp = yi if y_temp is None else y_temp * yi
            cnt += 1
        y_relu = jnp.maximum(y_temp, 0)                         # (C_inter, TM)
        z = jnp.dot(w2_ref[j], y_relu,
                    preferred_element_type=jnp.float32)         # (C_in, TM) f32
        # sigmoid(z) = 1 / (1 + exp(-z)) via EUP exp + approximate EUP recip.
        sig = pl.reciprocal(1.0 + jnp.exp(-z), approx=True)
        acc = sig if acc is None else acc + sig

    out = x_in.astype(jnp.float32) * (acc * inv_order)
    o_ref[...] = out.astype(o_ref.dtype)


def highdiv_pallas(x_nchw, w1_cat, w2, *, order, tile_m=None):
    """x_nchw: (N, C, H, W); w1_cat: (num1*C_inter, C_in); w2: (order, C_in, C_inter)."""
    N, C, H, W = x_nchw.shape
    n_w1, C_in = w1_cat.shape
    order2, C_in2, C_inter = w2.shape
    assert C_in == C and C_in2 == C and order2 == order
    assert n_w1 == (order * (order + 1) // 2) * C_inter

    HW = H * W
    x3 = x_nchw.reshape(N, C, HW)          # metadata-only reshape, no HBM pass

    io_dtype = x_nchw.dtype
    # bf16 I/O -> bf16 MXU operands and bf16 product chain (f32 accumulation
    # stays inside the kernel); otherwise keep f32 end-to-end (v5e-safe).
    compute_dtype = jnp.bfloat16 if io_dtype == jnp.bfloat16 else jnp.float32
    w1c = w1_cat.astype(compute_dtype)
    w2c = w2.astype(compute_dtype)

    # Spatial tile: large (amortize ~0.35us/step), lane-aligned, and chosen so
    # no wrapper-side pad/slice is ever materialized.
    if tile_m is None:
        target = 8192                                  # 128-aligned
        tile_m = HW if HW <= target else target
    n_tiles = pl.cdiv(HW, tile_m)

    # v7x has 2 TensorCores sharded over parallel grid axes: ensure >= 2 grid
    # steps when the problem allows a spatial split.
    if N * n_tiles < 2 and HW >= 256:
        tile_m = ((pl.cdiv(HW, 2) + 127) // 128) * 128
        n_tiles = pl.cdiv(HW, tile_m)

    # VMEM footprint estimate -> a vmem_limit that is valid on every
    # generation (never request v7x's entire 64 MiB).
    io_sz = jnp.dtype(io_dtype).itemsize
    cp_sz = jnp.dtype(compute_dtype).itemsize
    per_tile = tile_m * (2 * 2 * C * io_sz               # x/out, double-buffered
                         + (n_w1 + C) * cp_sz            # y_all + compute copy of x
                         + 3 * C * 4)                    # z / sigmoid / acc (f32)
    weight_bytes = (w1c.size + w2c.size) * cp_sz * 2
    vmem_limit = int(min(max(2 * per_tile + weight_bytes + (2 << 20), 16 << 20),
                         32 << 20))

    kernel = functools.partial(
        _highdiv_kernel, order=order, c_inter=C_inter,
        inv_order=1.0 / order, compute_dtype=compute_dtype)

    out = pl.pallas_call(
        kernel,
        out_shape=jax.ShapeDtypeStruct((N, C, HW), io_dtype),
        grid_spec=pltpu.PrefetchScalarGridSpec(
            num_scalar_prefetch=0,
            grid=(N, n_tiles),
            in_specs=[
                pl.BlockSpec((pl.Squeezed(), C, tile_m), lambda n, t: (n, 0, t)),
                pl.BlockSpec((n_w1, C), lambda n, t: (0, 0)),
                pl.BlockSpec((order, C, C_inter), lambda n, t: (0, 0, 0)),
            ],
            out_specs=pl.BlockSpec((pl.Squeezed(), C, tile_m),
                                   lambda n, t: (n, 0, t)),
        ),
        compiler_params=pltpu.CompilerParams(
            dimension_semantics=("parallel", "parallel"),
            vmem_limit_bytes=vmem_limit),
    )(x3, w1c, w2c)

    return out.reshape(N, C, H, W)


def highdiv_reference(x_nchw, w1_cat, w2, *, order, inter_channels):
    """Pure-JAX f32 reference matching the PyTorch forward."""
    N, C, H, W = x_nchw.shape
    x = x_nchw.astype(jnp.float32).reshape(N, C, H * W)
    acc = jnp.zeros_like(x)
    cnt = 0
    for j in range(order):
        y_temp = None
        for _ in range(j + 1):
            wk = w1_cat[cnt * inter_channels:(cnt + 1) * inter_channels].astype(jnp.float32)
            yi = jnp.einsum("dc,ncm->ndm", wk, x)
            y_temp = yi if y_temp is None else y_temp * yi
            cnt += 1
        y_relu = jnp.maximum(y_temp, 0.0)
        z = jnp.einsum("cd,ndm->ncm", w2[j].astype(jnp.float32), y_relu)
        acc = acc + jax.nn.sigmoid(z)
    out = x * acc / float(order)
    return out.reshape(N, C, H, W)


if __name__ == "__main__":
    # Module config: in_channels=32 -> inter_channels = 32//8*2 = 8; order=2.
    in_channels = 32
    order = 2
    inter_channels = in_channels // 8 * 2
    num1 = order * (order + 1) // 2          # number of stage-1 1x1 convs

    key = jax.random.PRNGKey(0)
    kx, kw1, kw2 = jax.random.split(key, 3)

    # Input: N=2, C=32, H=W=16 -> HW = 256 spatial positions per batch elem.
    x = jax.random.normal(kx, (2, in_channels, 16, 16), dtype=jnp.float32)
    # Stage-1 conv weights stacked along the output-channel axis
    # (PyTorch Conv2d weight [out, in, 1, 1] -> rows of (C_inter, C_in) blocks).
    w1_cat = 0.1 * jax.random.normal(
        kw1, (num1 * inter_channels, in_channels), dtype=jnp.float32)
    # Stage-2 conv weights: (order, out=C_in, in=C_inter).
    w2 = 0.1 * jax.random.normal(
        kw2, (order, in_channels, inter_channels), dtype=jnp.float32)

    ref = highdiv_reference(x, w1_cat, w2, order=order,
                            inter_channels=inter_channels)

    # f32 I/O path (approx EUP reciprocal in the sigmoid -> relaxed tolerance).
    out = jax.block_until_ready(highdiv_pallas(x, w1_cat, w2, order=order))
    assert out.shape == x.shape
    assert jnp.allclose(out.astype(jnp.float32), ref, atol=1e-2, rtol=1e-2), \
        "f32 mismatch vs reference"

    # bf16 I/O path: halves HBM traffic on the mem-bound generations; bf16
    # matmuls / product chain with f32 accumulation -> relaxed tolerance.
    x_bf16 = x.astype(jnp.bfloat16)
    out_bf16 = jax.block_until_ready(
        highdiv_pallas(x_bf16, w1_cat, w2, order=order))
    assert out_bf16.shape == x.shape and out_bf16.dtype == jnp.bfloat16
    assert jnp.allclose(out_bf16.astype(jnp.float32), ref, atol=1e-1, rtol=5e-2), \
        "bf16 mismatch vs reference"

    print("KERNEL_OK")
</pallas_src>

<mosaic_0001>
module attributes {stable_mosaic.version = 11 : i64} {
  func.func @_highdiv_kernel(%arg0: i32, %arg1: i32, %arg2: memref<1x32x256xf32, #tpu.memory_space<vmem>>, %arg3: memref<24x32xf32, #tpu.memory_space<vmem>>, %arg4: memref<2x32x8xf32, #tpu.memory_space<vmem>>, %arg5: memref<1x32x256xf32, #tpu.memory_space<vmem>>) attributes {dimension_semantics = [#tpu.dimension_semantics<parallel>, #tpu.dimension_semantics<parallel>], iteration_bounds = array<i64: 2, 1>, scalar_prefetch = 0 : i64, scratch_operands = 0 : i64, tpu.core_type = #tpu.core_type<tc>, window_params = [{transform_indices = @transform_0, window_bounds = array<i64: 1, 32, 256>}, {pipeline_mode = #tpu.pipeline_mode<synchronous>, transform_indices = @transform_1, window_bounds = array<i64: 24, 32>}, {pipeline_mode = #tpu.pipeline_mode<synchronous>, transform_indices = @transform_2, window_bounds = array<i64: 2, 32, 8>}, {transform_indices = @transform_3, window_bounds = array<i64: 1, 32, 256>}]} {
    %c0 = arith.constant 0 : index
    %c0_0 = arith.constant 0 : index
    %c0_1 = arith.constant 0 : index
    %0 = vector.load %arg2[%c0, %c0_0, %c0_1] : memref<1x32x256xf32, #tpu.memory_space<vmem>>, vector<1x32x256xf32>
    %1 = vector.shape_cast %0 : vector<1x32x256xf32> to vector<32x256xf32>
    %c0_2 = arith.constant 0 : index
    %c0_3 = arith.constant 0 : index
    %2 = vector.load %arg3[%c0_2, %c0_3] : memref<24x32xf32, #tpu.memory_space<vmem>>, vector<24x32xf32>
    %cst = arith.constant dense<0.000000e+00> : vector<24x256xf32>
    %3 = tpu.matmul %2, %1, %cst {dimension_numbers = #tpu.dot_dimension_numbers<[1], [0], [0], [1], [0, 0, 1, 1], [], []>} : vector<24x32xf32>, vector<32x256xf32>, vector<24x256xf32> -> vector<24x256xf32>
    %4 = vector.extract_strided_slice %3 {offsets = [0, 0], sizes = [8, 256], strides = [1, 1]} : vector<24x256xf32> to vector<8x256xf32>
    %cst_4 = arith.constant 0.000000e+00 : f32
    %5 = vector.broadcast %cst_4 : f32 to vector<8x256xf32>
    %6 = arith.maximumf %4, %5 : vector<8x256xf32>
    %c0_5 = arith.constant 0 : index
    %c0_6 = arith.constant 0 : index
    %c0_7 = arith.constant 0 : index
    %7 = vector.load %arg4[%c0_5, %c0_6, %c0_7] : memref<2x32x8xf32, #tpu.memory_space<vmem>>, vector<1x32x8xf32>
    %8 = vector.shape_cast %7 : vector<1x32x8xf32> to vector<32x8xf32>
    %cst_8 = arith.constant dense<0.000000e+00> : vector<32x256xf32>
    %9 = tpu.matmul %8, %6, %cst_8 {dimension_numbers = #tpu.dot_dimension_numbers<[1], [0], [0], [1], [0, 0, 1, 1], [], []>} : vector<32x8xf32>, vector<8x256xf32>, vector<32x256xf32> -> vector<32x256xf32>
    %cst_9 = arith.constant 0.000000e+00 : f32
    %10 = vector.broadcast %cst_9 : f32 to vector<32x256xf32>
    %11 = arith.subf %10, %9 : vector<32x256xf32>
    %12 = math.exp %11 : vector<32x256xf32>
    %cst_10 = arith.constant 1.000000e+00 : f32
    %13 = vector.broadcast %cst_10 : f32 to vector<32x256xf32>
    %14 = arith.addf %13, %12 : vector<32x256xf32>
    %15 = tpu.reciprocal %14 {approx = true} : vector<32x256xf32> -> vector<32x256xf32>
    %16 = vector.extract_strided_slice %3 {offsets = [8, 0], sizes = [8, 256], strides = [1, 1]} : vector<24x256xf32> to vector<8x256xf32>
    %17 = vector.extract_strided_slice %3 {offsets = [16, 0], sizes = [8, 256], strides = [1, 1]} : vector<24x256xf32> to vector<8x256xf32>
    %18 = arith.mulf %16, %17 : vector<8x256xf32>
    %cst_11 = arith.constant 0.000000e+00 : f32
    %19 = vector.broadcast %cst_11 : f32 to vector<8x256xf32>
    %20 = arith.maximumf %18, %19 : vector<8x256xf32>
    %c1 = arith.constant 1 : index
    %c0_12 = arith.constant 0 : index
    %c0_13 = arith.constant 0 : index
    %21 = vector.load %arg4[%c1, %c0_12, %c0_13] : memref<2x32x8xf32, #tpu.memory_space<vmem>>, vector<1x32x8xf32>
    %22 = vector.shape_cast %21 : vector<1x32x8xf32> to vector<32x8xf32>
    %cst_14 = arith.constant dense<0.000000e+00> : vector<32x256xf32>
    %23 = tpu.matmul %22, %20, %cst_14 {dimension_numbers = #tpu.dot_dimension_numbers<[1], [0], [0], [1], [0, 0, 1, 1], [], []>} : vector<32x8xf32>, vector<8x256xf32>, vector<32x256xf32> -> vector<32x256xf32>
    %cst_15 = arith.constant 0.000000e+00 : f32
    %24 = vector.broadcast %cst_15 : f32 to vector<32x256xf32>
    %25 = arith.subf %24, %23 : vector<32x256xf32>
    %26 = math.exp %25 : vector<32x256xf32>
    %cst_16 = arith.constant 1.000000e+00 : f32
    %27 = vector.broadcast %cst_16 : f32 to vector<32x256xf32>
    %28 = arith.addf %27, %26 : vector<32x256xf32>
    %29 = tpu.reciprocal %28 {approx = true} : vector<32x256xf32> -> vector<32x256xf32>
    %30 = arith.addf %15, %29 : vector<32x256xf32>
    %cst_17 = arith.constant 5.000000e-01 : f32
    %31 = vector.broadcast %cst_17 : f32 to vector<32x256xf32>
    %32 = arith.mulf %30, %31 : vector<32x256xf32>
    %33 = arith.mulf %1, %32 : vector<32x256xf32>
    %c0_18 = arith.constant 0 : index
    %c0_19 = arith.constant 0 : index
    %c0_20 = arith.constant 0 : index
    %34 = vector.load %arg5[%c0_18, %c0_19, %c0_20] : memref<1x32x256xf32, #tpu.memory_space<vmem>>, vector<1x32x256xf32>
    %35 = vector.shape_cast %34 : vector<1x32x256xf32> to vector<32x256xf32>
    %36 = vector.shape_cast %33 : vector<32x256xf32> to vector<1x32x256xf32>
    tpu.vector_store %arg5[%c0_18, %c0_19, %c0_20], %36 {strides = array<i32>} : memref<1x32x256xf32, #tpu.memory_space<vmem>>, vector<1x32x256xf32>,
    return
  }
  func.func @transform_0(%arg0: i32, %arg1: i32) -> (i32, i32, i32) {
    %c0_i32 = arith.constant 0 : i32
    %c0_i32_0 = arith.constant 0 : i32
    return %arg0, %c0_i32, %arg1 : i32, i32, i32
  }
  func.func @transform_1(%arg0: i32, %arg1: i32) -> (i32, i32) {
    %c0_i32 = arith.constant 0 : i32
    %c0_i32_0 = arith.constant 0 : i32
    %c0_i32_1 = arith.constant 0 : i32
    return %c0_i32, %c0_i32_0 : i32, i32
  }
  func.func @transform_2(%arg0: i32, %arg1: i32) -> (i32, i32, i32) {
    %c0_i32 = arith.constant 0 : i32
    %c0_i32_0 = arith.constant 0 : i32
    %c0_i32_1 = arith.constant 0 : i32
    %c0_i32_2 = arith.constant 0 : i32
    return %c0_i32, %c0_i32_0, %c0_i32_1 : i32, i32, i32
  }
  func.func @transform_3(%arg0: i32, %arg1: i32) -> (i32, i32, i32) {
    %c0_i32 = arith.constant 0 : i32
    %c0_i32_0 = arith.constant 0 : i32
    return %arg0, %c0_i32, %arg1 : i32, i32, i32
  }
}

</mosaic_0001>

<bundles_post_ra>
// kernel: tpu_custom_call.1
= control target key start
LH: loop header
LB: loop body
LE: loop exit
PB: predicated region body
PF: predicated region fallthrough
CT: control target
= control target key end

     0   :  { %8 = vsyncpa [#allocation3], 0  ;;  %s1293_s0 = inlined_call_operand.hbm [shape: f32[2,32,256], index: 0, kind: input, shape index: {}]   ;;  %s1294_s1 = inlined_call_operand.vmem [shape: f32[24,32], index: 1, kind: input, shape index: {}]   ;;  %s1295_s2 = inlined_call_operand.vmem [shape: f32[2,32,8], index: 2, kind: input, shape index: {}]   ;;  %s1296_s3 = inlined_call_operand.hbm [shape: f32[2,32,256], index: 3, kind: output, shape index: {}]  }
   0x1   :  { %10 = vsyncpa [#allocation3 + $0x1], 0 }
   0x2   :  { %11 = vsyncpa [#allocation4], 0 }
   0x3   :  { %13 = vsyncpa [#allocation4 + $0x1], 0  ;;  %s1048_s12 = smov 0   ;;  %s1050_s13 = smov 0  }
   0x4   :  { %s1052_s14 = smov 0   ;;  %s1054_s15 = smov 0  }
   0x5   :  { %s1056_s16 = smov 0   ;;  %s1058_s17 = smov 0  }
   0x6 LB: > { %s746_s18 = sadd.s32 4294967295, %s1019_s17   ;;  %s747_s19 = sadd.s32 4294967294, %s1019_s17   ;;  %s1019_s17 = sphi %s1058_s17, %s19_s17   ;;  %s1015_s16 = sphi %s1056_s16, %s1307_s16   ;;  %s1011_s15 = sphi %s1054_s15, %s1306_s15   ;;  %s1007_s14 = sphi %s1052_s14, %s1305_s14   ;;  %s1003_s13 = sphi %s1050_s13, %s1304_s13   ;;  %s999_s12 = sphi %s1048_s12, %s1303_s12  }
   0x7   : > { %s31_s20 = sadd.s32 1, %s1015_s16  ;;  %s40_s21 = sadd.s32 1, %s1007_s14 }
   0x8   : > { %p33_p0 = scmp.ge.s32.totalorder %s31_s20, 2  ;;  %p47_p1 = scmp.ne.s32.totalorder %s1007_s14, %s1003_s13 }
   0x9   : > { %p48_p2 = scmp.eq.s32.totalorder %s1019_s17, 0  ;;  %p53_p3 = scmp.ne.s32.totalorder %s1003_s13, %s999_s12 }
   0xa   : > { %s1309_s20 = smov (%p33_p0, %s31_s20), 0  ;;  %p54_p5 = scmp.eq.s32.totalorder %s746_s18, 0 }
   0xb   : > { %p1089_p4 = por %p48_p2, %p47_p1  ;;  %s35_s23 = ssub.s32 %s1015_s16, %s1309_s20 }
   0xc   : > { %p121_p6 = scmp.eq.s32.totalorder %s746_s18, 1  ;;  %p38_p7 = scmp.eq.s32.totalorder %s35_s23, 0 }
   0xd   : > { %p1095_p8 = por %p54_p5, %p53_p3  ;;  %p127_p10 = scmp.eq.s32.totalorder %s747_s19, 1 }
   0xe   : > { %p1099_p9 = por %p121_p6, %p47_p1  ;;  %p792_p13 = scmp.lt.s32.totalorder %s1019_s17, 2 }
   0xf   : > { %s1104_s26 = scalar_select %p38_p7, %s1007_s14, %s40_s21  }
  0x10   : > { %p1106_p11 = por %p127_p10, %p53_p3  ;;  %s153_s28 = sand.u32 1, %s1007_s14  }
  0x11   : > { %s750_s29 = sshll.u32 %s153_s28, 6  ;;  %s776_s30 = sshll.u32 %s1015_s16, 10 }
  0x12   : > { %s165_s6 = scalar_lea.hbm %s1293_s0, %s776_s30  ;;  %s157_s7 = scalar_lea.vmem [#allocation2], %s750_s29 }
  0x13   : > { %s166_s8 = sshll.u32 %s157_s7, 4  ;;  %p1119_p0 = pnand %p792_p13, %p1089_p4  ;;  %s167_s8 = int_to_ptr.vmem [resolvable:$true] %s166_s8 }
  0x14   : > { %p753_p1 = scmp.ge.s32.totalorder %s1019_s17, 1  ;;  %s154_s10 = scalar_lea.sflag [#allocation3], %s153_s28 }
  0x15   : > { %p913_p2 = pneg %p1119_p0  ;;  %s924_s11 = scalar_lea.vmem %s167_s8, 1024 }
  0x16   : > { %p925_p3 = scmp.ne.s32.totalorder %s167_s8, %s924_s11  ;;  %s1021_s18 = smov [#allocation2]  }
  0x17   : > { %s929_s19 = sshll.u32 %s1021_s18, 4  ;;  %s930_s19 = int_to_ptr.vmem [resolvable:$false] %s929_s19 }
  0x18   : > { %p927_p5 = pnand %p925_p3, %p913_p2  ;;  %s931_s21 = scalar_lea.vmem %s930_s19, 2048 }
  0x19   : > { %p932_p7 = scmp.lt.s32.totalorder %s167_s8, %s930_s19  ;;  %p933_p10 = scmp.lt.s32.totalorder %s931_s21, %s924_s11 }
  0x1a   : > { %p928_p6 = pneg %p927_p5 }
  0x1b   : > { %p934_p12 = por %p933_p10, %p932_p7 }
  0x1d   : > { %p935_p4 = pnand %p934_p12, %p928_p6 }
  0x1f   : > { %938 = shalt.err (!%p935_p4)
}
  0x20   : > { %s1022_s22 = smov 256   ;;  %s1023_s23 = smov 16  }
  0x21   : > { %787 = dma.hbm_to_vmem [thread:$0]  (!%p1119_p0), %s165_s6, 1024, %s167_s8, %s154_s10, %s1022_s22, %s1022_s22, %s1023_s23  }
  0x22   : > { %p174_p13 = scmp.lt.s32.totalorder %s1019_s17, 3 }
  0x24   : > { %p175_p2 = pnand %p753_p1, %p174_p13 }
  0x25   : > { %s1132_s28 = sand.u32 (!%p175_p2), 1, %s1003_s13  }
  0x26   : > { %178 = sbr.rel (%p175_p2) target bundleno = 531 (0x213), region = 32  ;;  %s754_s29 = sshll.u32 (!%p175_p2), %s1132_s28, 6 }
  0x27   : > { %s181_s30 = scalar_lea.sflag (!%p175_p2), [#allocation3], %s1132_s28  ;;  %s184_s4 = scalar_lea.vmem (!%p175_p2), [#allocation2], %s754_s29 }
  0x2b   : > { %990 = dma.done.wait (%p1095_p8), %s181_s30, 1024  }
  0x2c   : > { %992 = vsyncadd (%p1095_p8), %s181_s30, 4294966272  ;;  %v1024_v0 = vmov 0.0   ;;  %v1144_v1 = vld [vmem:[%s184_s4 + $0x38] sm:$0xff]  ;;  %v1146_v2 = vld [vmem:[%s184_s4 + $0x30] sm:$0xff]  ;;  %vm220_vm0 = vcmask 261120   ;;  %vm319_vm1 = vcmask 64512  }
  0x2d   : > { %294 = vmatprep.mubr.f32.mxu0 %v1024_v0  ;;  %402 = vmatprep.mubr.f32.mxu1 %v1024_v0  ;;  %v1148_v3 = vld [vmem:[%s184_s4 + $0x28] sm:$0xff]  ;;  %v1151_v4 = vld [vmem:[%s184_s4 + $0x20] sm:$0xff]  ;;  %v1154_v5 = vld [vmem:[%s184_s4 + $0x18] sm:$0xff]  ;;  %s1221_s11 = scalar_lea.vmem [#allocation5], %s754_s29  ;;  %s777_s29 = sshll.u32 %s1011_s15, 10 }
  0x2e   : > { %254 = vmatprep.subr.mxu0 %v1144_v1  ;;  %v1157_v6 = vld [vmem:[%s184_s4 + $0x10] sm:$0xff]  ;;  %v1160_v7 = vld [vmem:[%s184_s4 + $0x8] sm:$0xff]  ;;  %v1163_v8 = vld [vmem:[%s184_s4] sm:$0xff]  ;;  %s659_s18 = sshll.u32 %s1221_s11, 4  ;;  %s1240_s22 = scalar_lea.hbm %s1296_s3, %s777_s29  ;;  %s1242_s18 = int_to_ptr.vmem [resolvable:$true] %s659_s18 }
  0x2f   : > { %255 = vmatpush1.msra.mxu0 %v1146_v2  ;;  %v217_v9 = vld [vmem:[%s1294_s1] sm:$0xff]  ;;  %v218_v10 = vld [vmem:[%s1294_s1 + $0x8] sm:$0xff]  ;;  %v219_v11 = vld [vmem:[%s1294_s1 + $0x10] sm:$0xff]  ;;  %s644_s15 = scalar_lea.sflag [#allocation4], %s1132_s28  ;;  %s939_s23 = scalar_lea.vmem %s1242_s18, 1024 }
  0x30   : > { %256 = vmatprep.subr.mxu0 %v1148_v3  ;;  %v316_v17 = vld [vmem:[%s1295_s2 + $0x8] sm:$0xff]  ;;  %v315_v18 = vld [vmem:[%s1295_s2] sm:$0xff]  ;;  %v317_v21 = vld [vmem:[%s1295_s2 + $0x10] sm:$0xff]  ;;  %p940_p8 = scmp.ne.s32.totalorder %s1242_s18, %s939_s23  ;;  %s1025_s30 = smov [#allocation5]  }
  0x31   : > { %257 = vmatpush1.msra.mxu0 %v1151_v4  ;;  %v318_v25 = vld [vmem:[%s1295_s2 + $0x18] sm:$0xff]  ;;  %v763_v28 = vld [vmem:[%s1295_s2 + $0x20] sm:$0xff]  ;;  %v764_v29 = vld [vmem:[%s1295_s2 + $0x28] sm:$0xff]  ;;  %s943_s4 = sshll.u32 %s1025_s30, 4  ;;  %s944_s4 = int_to_ptr.vmem [resolvable:$false] %s943_s4 }
  0x32   : > { %258 = vmatprep.subr.mxu0 %v1154_v5  ;;  %v765_v30 = vld [vmem:[%s1295_s2 + $0x30] sm:$0xff]  ;;  %v766_v31 = vld [vmem:[%s1295_s2 + $0x38] sm:$0xff]  ;;  %p941_p12 = pnand %p940_p8, %p1099_p9  ;;  %s945_s24 = scalar_lea.vmem %s944_s4, 2048 }
  0x33   : > { %259 = vmatpush1.msra.mxu0 %v1157_v6  ;;  %p946_p1 = scmp.lt.s32.totalorder %s1242_s18, %s944_s4  ;;  %p947_p3 = scmp.lt.s32.totalorder %s945_s24, %s939_s23 }
  0x34   : > { %260 = vmatprep.subr.mxu0 %v1160_v7  ;;  %p942_p0 = pneg %p941_p12 }
  0x35   : > { %261 = vmatpush1.msra.mxu0 %v1163_v8  ;;  %p948_p5 = por %p947_p3, %p946_p1 }
  0x36   : > { %756 = vmatmul.mubr.msk.f32.vlgmr.msra.gmra.mxu0 %vm220_vm0, %v217_v9 }
  0x37   : > { %300 = vmatprep.mubr.f32.mxu0 %v1024_v0  ;;  %p949_p6 = pnand %p948_p5, %p942_p0 }
  0x3a   : > { %757 = vmatmul.mubr.msk.f32.gmra.mxu0 %vm220_vm0, %v218_v10 }
  0x3b   : > { %306 = vmatprep.mubr.f32.mxu0 %v1024_v0 }
  0x3e   : > { %758 = vmatmul.mubr.msk.f32.gmra.mxu0 %vm220_vm0, %v219_v11 }
  0x3f   : > { %396 = vmatprep.mubr.f32.mxu0 %v1024_v0 }
  0xf6   : > { %v296_v12 = vpop.f32.mrf.mxu0 }
  0xf7   : > { %v313_v15 = vmax.f32 %v296_v12, 0.0 }
  0xf8   : > { %v298_v13 = vpop.f32.mrf.mxu0 }
  0xf9   : > { %v314_v14 = vmax.f32 %v298_v13, 0.0 }
  0xfa   : > { %v302_v16 = vpop.f32.mrf.mxu0 }
  0xfb   : > { %362 = vmatprep.subr.mxu0 %v314_v14  ;;  %778 = vmatprep.subr.mxu1 %v314_v14 }
  0xfc   : > { %v304_v19 = vpop.f32.mrf.mxu0  ;;  %363 = vmatpush1.msra.mxu0 %v313_v15  ;;  %779 = vmatpush1.msra.mxu1 %v313_v15 }
  0xfd   : > { %760 = vmatmul.mubr.msk.f32.vlgmr.msra.gmra.mxu1 %vm319_vm1, %v316_v17  ;;  %759 = vmatmul.mubr.msk.f32.vlgmr.msra.gmra.mxu0 %vm319_vm1, %v315_v18 }
  0xfe   : > { %v308_v20 = vpop.f32.mrf.mxu0  ;;  %408 = vmatprep.mubr.f32.mxu1 %v1024_v0 }
  0xff   : > { %v461_v22 = vmul.f32 %v308_v20, %v302_v16 }
 0x100   : > { %v310_v23 = vpop.f32.mrf.mxu0 }
 0x101   : > { %v462_v24 = vmul.f32 %v310_v23, %v304_v19  ;;  %761 = vmatmul.mubr.msk.f32.gmra.mxu1 %vm319_vm1, %v317_v21  ;;  %v463_v27 = vmax.f32 %v461_v22, 0.0 }
 0x102   : > { %414 = vmatprep.mubr.f32.mxu1 %v1024_v0 }
 0x103   : > { %v464_v26 = vmax.f32 %v462_v24, 0.0 }
 0x105   : > { %762 = vmatmul.mubr.msk.f32.gmra.mxu1 %vm319_vm1, %v318_v25  ;;  %512 = vmatprep.subr.mxu1 %v464_v26 }
 0x106   : > { %513 = vmatpush1.msra.mxu1 %v463_v27  ;;  %546 = vmatprep.mubr.f32.mxu1 %v1024_v0 }
 0x109   : > { %767 = vmatmul.mubr.msk.f32.vlgmr.msra.gmra.mxu1 %vm319_vm1, %v763_v28 }
 0x10a   : > { %552 = vmatprep.mubr.f32.mxu1 %v1024_v0 }
 0x10d   : > { %768 = vmatmul.mubr.msk.f32.gmra.mxu1 %vm319_vm1, %v764_v29 }
 0x10e   : > { %558 = vmatprep.mubr.f32.mxu1 %v1024_v0 }
 0x111   : > { %769 = vmatmul.mubr.msk.f32.gmra.mxu1 %vm319_vm1, %v765_v30 }
 0x112   : > { %564 = vmatprep.mubr.f32.mxu1 %v1024_v0 }
 0x115   : > { %770 = vmatmul.mubr.msk.f32.gmra.mxu1 %vm319_vm1, %v766_v31 }
 0x1bd   : > { %v404_v32 = vpop.f32.mrf.mxu1  ;;  %v398_v33 = vpop.f32.mrf.mxu0 }
 0x1be   : > { %v421_v35 = vsub.f32 0.0, %v398_v33  ;;  %v423_v42 = vsub.f32 0.0, %v404_v32 }
 0x1bf   : > { %v406_v34 = vpop.f32.mrf.mxu1  ;;  %v400_v36 = vpop.f32.mrf.mxu0 }
 0x1c0   : > { %v422_v37 = vsub.f32 0.0, %v400_v36  ;;  %v429_v40 = vmul.f32 1.442695, %v421_v35  ;;  %v424_v44 = vsub.f32 0.0, %v406_v34  ;;  %v433_v46 = vmul.f32 1.442695, %v423_v42 }
 0x1c1   : > { %v410_v38 = vpop.f32.mrf.mxu1 }
 0x1c2   : > { %v431_v41 = vmul.f32 1.442695, %v422_v37  ;;  %847 = vpow2.f32 %v429_v40  ;;  %v435_v49 = vmul.f32 1.442695, %v424_v44  ;;  %v425_v50 = vsub.f32 0.0, %v410_v38 }
 0x1c3   : > { %v412_v39 = vpop.f32.mrf.mxu1 }
 0x1c4   : > { %849 = vpow2.f32 %v431_v41  ;;  %v437_v57 = vmul.f32 1.442695, %v425_v50  ;;  %v426_v58 = vsub.f32 0.0, %v412_v39 }
 0x1c5   : > { %v416_v43 = vpop.f32.mrf.mxu1  ;;  %851 = vpow2.f32 %v433_v46 }
 0x1c6   : > { %v427_v60 = vsub.f32 0.0, %v416_v43  ;;  %v439_v11 = vmul.f32 1.442695, %v426_v58 }
 0x1c7   : > { %v418_v45 = vpop.f32.mrf.mxu1 }
 0x1c8   : > { %v428_v0 = vsub.f32 0.0, %v418_v45  ;;  %v441_v14 = vmul.f32 1.442695, %v427_v60 }
 0x1c9   : > { %v548_v47 = vpop.f32.mrf.mxu1 }
 0x1ca   : > { %v571_v48 = vsub.f32 0.0, %v548_v47  ;;  %v443_v19 = vmul.f32 1.442695, %v428_v0 }
 0x1cb   : > { %v550_v51 = vpop.f32.mrf.mxu1 }
 0x1cc   : > { %v579_v52 = vmul.f32 1.442695, %v571_v48  ;;  %v572_v53 = vsub.f32 0.0, %v550_v51 }
 0x1cd   : > { %v554_v54 = vpop.f32.mrf.mxu1 }
 0x1ce   : > { %853 = vpow2.f32 %v579_v52  ;;  %v581_v55 = vmul.f32 1.442695, %v572_v53  ;;  %v573_v56 = vsub.f32 0.0, %v554_v54 }
 0x1cf   : > { %855 = vpow2.f32 %v435_v49  ;;  %v556_v59 = vpop.f32.mrf.mxu1  ;;  %v848_v13 = vpop.eup %847 }
 0x1d0   : > { %857 = vpow2.f32 %v581_v55  ;;  %v583_v61 = vmul.f32 1.442695, %v573_v56  ;;  %v574_v62 = vsub.f32 0.0, %v556_v59  ;;  %v445_v20 = vadd.f32 1.0, %v848_v13 }
 0x1d1   : > { %v560_v63 = vpop.f32.mrf.mxu1  ;;  %v850_v15 = vpop.eup %849 }
 0x1d2   : > { %v585_v9 = vmul.f32 1.442695, %v574_v62  ;;  %v575_v10 = vsub.f32 0.0, %v560_v63  ;;  %859 = vpow2.f32 %v583_v61  ;;  %v446_v23 = vadd.f32 1.0, %v850_v15  ;;  %v852_v26 = vpop.eup %851 }
 0x1d3   : > { %v562_v12 = vpop.f32.mrf.mxu1  ;;  %861 = vpow2.f32 %v437_v57  ;;  %v447_v33 = vadd.f32 1.0, %v852_v26 }
 0x1d4   : > { %863 = vpow2.f32 %v585_v9  ;;  %v587_v16 = vmul.f32 1.442695, %v575_v10  ;;  %v576_v17 = vsub.f32 0.0, %v562_v12 }
 0x1d5   : > { %v566_v18 = vpop.f32.mrf.mxu1  ;;  %865 = vpow2.f32 %v439_v11 }
 0x1d6   : > { %v577_v21 = vsub.f32 0.0, %v566_v18  ;;  %867 = vpow2.f32 %v441_v14  ;;  %v589_v24 = vmul.f32 1.442695, %v576_v17 }
 0x1d7   : > { %v568_v22 = vpop.f32.mrf.mxu1  ;;  %869 = vpow2.f32 %v587_v16 }
 0x1d8   : > { %v578_v25 = vsub.f32 0.0, %v568_v22  ;;  %871 = vpow2.f32 %v443_v19  ;;  %v591_v28 = vmul.f32 1.442695, %v577_v21 }
 0x1d9   : > { %873 = vrcp.f32 %v445_v20 }
 0x1da   : > { %875 = vrcp.f32 %v446_v23  ;;  %v593_v32 = vmul.f32 1.442695, %v578_v25 }
 0x1db   : > { %v854_v27 = vpop.eup %853  ;;  %877 = vpow2.f32 %v589_v24 }
 0x1dc   : > { %v856_v29 = vpop.eup %855  ;;  %v595_v30 = vadd.f32 1.0, %v854_v27 }
 0x1dd   : > { %v858_v31 = vpop.eup %857  ;;  %v448_v36 = vadd.f32 1.0, %v856_v29 }
 0x1de   : > { %879 = vrcp.f32 %v595_v30  ;;  %v596_v34 = vadd.f32 1.0, %v858_v31 }
 0x1df   : > { %881 = vpow2.f32 %v591_v28  ;;  %v860_v35 = vpop.eup %859 }
 0x1e0   : > { %883 = vrcp.f32 %v596_v34  ;;  %v862_v37 = vpop.eup %861  ;;  %v597_v38 = vadd.f32 1.0, %v860_v35 }
 0x1e1   : > { %885 = vpow2.f32 %v593_v32  ;;  %v864_v39 = vpop.eup %863  ;;  %v449_v42 = vadd.f32 1.0, %v862_v37 }
 0x1e2   : > { %887 = vrcp.f32 %v447_v33  ;;  %v598_v40 = vadd.f32 1.0, %v864_v39  ;;  %v866_v41 = vpop.eup %865 }
 0x1e3   : > { %889 = vrcp.f32 %v597_v38  ;;  %v868_v43 = vpop.eup %867  ;;  %v450_v48 = vadd.f32 1.0, %v866_v41 }
 0x1e4   : > { %891 = vrcp.f32 %v448_v36  ;;  %v870_v44 = vpop.eup %869  ;;  %v451_v51 = vadd.f32 1.0, %v868_v43 }
 0x1e5   : > { %893 = vrcp.f32 %v598_v40  ;;  %v872_v45 = vpop.eup %871  ;;  %v599_v46 = vadd.f32 1.0, %v870_v44 }
 0x1e6   : > { %v874_v47 = vpop.eup %873  ;;  %895 = vrcp.f32 %v449_v42  ;;  %v452_v55 = vadd.f32 1.0, %v872_v45 }
 0x1e7   : > { %v876_v49 = vpop.eup %875  ;;  %897 = vrcp.f32 %v599_v46 }
 0x1e8   : > { %v878_v50 = vpop.eup %877  ;;  %899 = vrcp.f32 %v450_v48 }
 0x1e9   : > { %v600_v53 = vadd.f32 1.0, %v878_v50 }
 0x1eb   : > { %v880_v52 = vpop.eup %879  ;;  %901 = vrcp.f32 %v600_v53 }
 0x1ec   : > { %v882_v54 = vpop.eup %881  ;;  %v611_v56 = vadd.f32 %v880_v52, %v874_v47  ;;  %903 = vrcp.f32 %v451_v51 }
 0x1ed   : > { %v884_v57 = vpop.eup %883  ;;  %v601_v58 = vadd.f32 1.0, %v882_v54 }
 0x1ee   : > { %v886_v59 = vpop.eup %885  ;;  %v619_v60 = vmul.f32 0.5, %v611_v56  ;;  %v612_v61 = vadd.f32 %v884_v57, %v876_v49 }
 0x1ef   : > { %v888_v62 = vpop.eup %887  ;;  %905 = vrcp.f32 %v601_v58  ;;  %v602_v63 = vadd.f32 1.0, %v886_v59 }
 0x1f0   : > { %v890_v0 = vpop.eup %889  ;;  %907 = vrcp.f32 %v452_v55  ;;  %v627_v9 = vmul.f32 %v619_v60, %v1163_v8  ;;  %v620_v10 = vmul.f32 0.5, %v612_v61 }
 0x1f1   : > { %v892_v11 = vpop.eup %891  ;;  %v613_v12 = vadd.f32 %v890_v0, %v888_v62  ;;  %909 = vrcp.f32 %v602_v63 }
 0x1f2   : > { %v894_v13 = vpop.eup %893  ;;  %635 = vst [vmem:[%s1221_s11] sm:$0xff] %v627_v9  ;;  %v628_v14 = vmul.f32 %v620_v10, %v1160_v7 }
 0x1f3   : > { %v621_v15 = vmul.f32 0.5, %v613_v12  ;;  %v614_v16 = vadd.f32 %v894_v13, %v892_v11  ;;  %v896_v17 = vpop.eup %895 }
 0x1f4   : > { %636 = vst [vmem:[%s1221_s11 + $0x8] sm:$0xff] %v628_v14  ;;  %v898_v19 = vpop.eup %897 }
 0x1f5   : > { %v629_v8 = vmul.f32 %v621_v15, %v1157_v6  ;;  %v622_v18 = vmul.f32 0.5, %v614_v16  ;;  %v615_v21 = vadd.f32 %v898_v19, %v896_v17  ;;  %v900_v22 = vpop.eup %899 }
 0x1f7   : > { %637 = vst [vmem:[%s1221_s11 + $0x10] sm:$0xff] %v629_v8  ;;  %v630_v20 = vmul.f32 %v622_v18, %v1154_v5  ;;  %v623_v23 = vmul.f32 0.5, %v615_v21 }
 0x1f8   : > { %v902_v7 = vpop.eup %901 }
 0x1f9   : > { %638 = vst [vmem:[%s1221_s11 + $0x18] sm:$0xff] %v630_v20  ;;  %v904_v24 = vpop.eup %903  ;;  %v631_v25 = vmul.f32 %v623_v23, %v1151_v4  ;;  %v616_v26 = vadd.f32 %v902_v7, %v900_v22 }
 0x1fb   : > { %639 = vst [vmem:[%s1221_s11 + $0x20] sm:$0xff] %v631_v25  ;;  %v624_v28 = vmul.f32 0.5, %v616_v26 }
 0x1fc   : > { %v906_v27 = vpop.eup %905 }
 0x1fd   : > { %v908_v6 = vpop.eup %907  ;;  %v617_v5 = vadd.f32 %v906_v27, %v904_v24  ;;  %v632_v30 = vmul.f32 %v624_v28, %v1148_v3 }
 0x1fe   : > { %v910_v29 = vpop.eup %909 }
 0x1ff   : > { %v625_v31 = vmul.f32 0.5, %v617_v5  ;;  %v618_v32 = vadd.f32 %v910_v29, %v908_v6  ;;  %640 = vst [vmem:[%s1221_s11 + $0x28] sm:$0xff] %v632_v30 }
 0x201   : > { %v633_v4 = vmul.f32 %v625_v31, %v1146_v2  ;;  %v626_v33 = vmul.f32 0.5, %v618_v32 }
 0x203   : > { %641 = vst [vmem:[%s1221_s11 + $0x30] sm:$0xff] %v633_v4  ;;  %v634_v3 = vmul.f32 %v626_v33, %v1144_v1 }
 0x205   : > { %642 = vst [vmem:[%s1221_s11 + $0x38] sm:$0xff] %v634_v3 }
 0x206   : > { %952 = shalt.err (!%p949_p6)
}
 0x207   : > { %s953_s5 = scalar_lea.hbm %s1240_s22, 1024  ;;  %s957_s8 = scalar_lea.hbm %s1296_s3, 2048 }
 0x208   : > { %p954_p7 = scmp.ne.s32.totalorder %s1240_s22, %s953_s5  ;;  %p958_p13 = scmp.lt.s32.totalorder %s1240_s22, %s1296_s3 }
 0x209   : > { %p959_p2 = scmp.lt.s32.totalorder %s957_s8, %s953_s5 }
 0x20a   : > { %p955_p10 = pnand %p954_p7, %p1099_p9 }
 0x20b   : > { %p960_p8 = por %p959_p2, %p958_p13 }
 0x20c   : > { %p956_p4 = pneg %p955_p10 }
 0x20e   : > { %p961_p12 = pnand %p960_p8, %p956_p4 }
 0x210   : > { %964 = shalt.err (!%p961_p12)
}
 0x211   : > { %s1026_s11 = smov 256   ;;  %s1027_s29 = smov 16  }
 0x212   : > { %782 = dma.vmem_to_hbm [thread:$0]  (%p1099_p9), %s1242_s18, 1024, %s1240_s22, %s644_s15, %s1026_s11, %s1026_s11, %s1027_s29  }
 0x213 PF: > { %s674_s19 = sand.u32 1, %s999_s12   ;;  %p1302_p0 = scmp.ge.s32.totalorder %s1019_s17, 2 }
 0x214   : > { %s675_s21 = scalar_lea.sflag [#allocation4], %s674_s19 }
 0x215   : > { %p789_p1 = pnand %p1302_p0, %p1106_p11 }
 0x217   : > { %p790_p3 = pneg %p789_p1 }
 0x219   : > { %994 = dma.done.wait (%p790_p3), %s675_s21, 1024  }
 0x21a   : > { %996 = vsyncadd (%p790_p3), %s675_s21, 4294966272  ;;  %s19_s17 = sadd.s32 1, %s1019_s17   ;;  %s1303_s12 = smov %s1003_s13 }
 0x21b   : > { %p16_p5 = scmp.ge.s32.totalorder %s19_s17, 4   ;;  %s1304_s13 = smov %s1007_s14 }
 0x21c   : > { %s1305_s14 = smov %s1104_s26  ;;  %s1306_s15 = smov %s1015_s16 }
 0x21d   : > { %s1307_s16 = smov %s1309_s20  ;;  %18 = sbr.rel (!%p16_p5) target bundleno = 6 (0x6), region = 78 }
 0x222   :  { %680 = vsyncpa [#allocation3], 1 }
 0x223   :  { %682 = vsyncpa [#allocation3 + $0x1], 1 }
 0x224   :  { %683 = vsyncpa [#allocation4], 1 }
 0x225   :  { %685 = vsyncpa [#allocation4 + $0x1], 1 }

</bundles_post_ra>
